<compile_context>
chip_gen: v7x
topology: tpu7x:2x2x1
jax: 0.10.0
libtpu: 0.0.40
codegen_flags: <defaults>
</compile_context>

<pallas_src>
import functools

import jax
import jax.numpy as jnp
from jax.experimental import pallas as pl
from jax.experimental.pallas import tpu as pltpu

BN_EPS = 1e-5
LANE = 128


def _round_up(x, m):
    return (x + m - 1) // m * m


def _vmem_limit_bytes():
    """Device-derived scoped-VMEM limit (v7x only has 64 MiB physical)."""
    try:
        cap = pltpu.get_tpu_info().vmem_capacity_bytes
    except Exception:
        cap = 64 * 1024 * 1024
    return int(min(cap * 0.45, 48 * 1024 * 1024))


def _largest_divisor(n, max_val, multiple_of):
    for d in range(min(n, max_val), 0, -1):
        if n % d == 0 and d % multiple_of == 0:
            return d
    return None


def _pick_th(H, W, kdim, budget_bytes, max_rows):
    """Largest th | H with (th*W) % 8 == 0 whose slab + accumulator fit."""
    for th in range(H, 0, -1):
        if H % th:
            continue
        rows = th * W
        if rows % 8 or rows > max_rows:
            continue
        slab = 2 * (th + 2) * W * kdim * 2          # double-buffered bf16 slab
        acc = rows * LANE * 4                       # f32 accumulator
        if slab + 3 * acc <= budget_bytes:
            return th
    raise ValueError("no valid row tile: need th | H with (th*W) % 8 == 0")


# ----------------------------------------------------------------------------
# Phase 1 (k=1): conv (two narrow-K MXU matmuls, x/y kept separate), resident
# per-channel sum / sum-of-squares, and a narrow bf16 conv-output cache.
# ----------------------------------------------------------------------------
def _stats1_kernel(x_ref, y_ref, wx_ref, wy_ref, sum_ref, sq_ref, cache_ref,
                   *, cout):
    @pl.when(pl.program_id(0) == 0)
    def _():
        sum_ref[...] = jnp.zeros_like(sum_ref)
        sq_ref[...] = jnp.zeros_like(sq_ref)

    xa = x_ref[...].astype(jnp.bfloat16)            # in-VMEM cast (no host cast)
    ya = y_ref[...].astype(jnp.bfloat16)
    acc = jnp.dot(xa, wx_ref[...], preferred_element_type=jnp.float32)
    acc = acc + jnp.dot(ya, wy_ref[...], preferred_element_type=jnp.float32)

    sum_ref[...] += jnp.sum(acc, axis=0, keepdims=True)
    sq_ref[...] += jnp.sum(acc * acc, axis=0, keepdims=True)
    cache_ref[...] = acc[:, :cout].astype(cache_ref.dtype)


# ----------------------------------------------------------------------------
# Phase 1 (k=3): manual double-buffered DMA of a ((th+2)*W, 3*Cin) row slab
# (2 halo rows) from HBM, then 3 dy-shifted matmuls.  The dy shifts are just
# sublane-offset slices of the slab; the dx shifts were folded into the 3*Cin
# column layout on the host (3x expansion only, vs. the old 9x im2col).
# ----------------------------------------------------------------------------
def _stats3_kernel(a_hbm, w_ref, sum_ref, sq_ref, cache_ref, slab, sem,
                   *, H, W, th, cout):
    step = pl.program_id(0)
    total = pl.num_programs(0)
    tiles_per_img = H // th
    rows_main = th * W
    rows_slab = (th + 2) * W

    def a_row_offset(s):
        n = s // tiles_per_img
        i = s % tiles_per_img
        return (n * (H + 2) + i * th) * W

    def start_fetch(s, slot):
        pltpu.make_async_copy(
            a_hbm.at[pl.ds(a_row_offset(s), rows_slab)],
            slab.at[slot], sem.at[slot]).start()

    @pl.when(step == 0)
    def _():
        sum_ref[...] = jnp.zeros_like(sum_ref)
        sq_ref[...] = jnp.zeros_like(sq_ref)
        start_fetch(0, 0)

    @pl.when(step + 1 < total)                       # prefetch next slab
    def _():
        start_fetch(step + 1, (step + 1) % 2)

    slot = step % 2
    pltpu.make_async_copy(                           # wait on current slab
        a_hbm.at[pl.ds(0, rows_slab)], slab.at[slot], sem.at[slot]).wait()

    blk = slab[slot]                                 # ((th+2)*W, 3*Cin) bf16
    acc = jnp.dot(blk[0:rows_main], w_ref[0],
                  preferred_element_type=jnp.float32)
    for dy in (1, 2):
        acc = acc + jnp.dot(blk[dy * W: dy * W + rows_main], w_ref[dy],
                            preferred_element_type=jnp.float32)

    sum_ref[...] += jnp.sum(acc, axis=0, keepdims=True)
    sq_ref[...] += jnp.sum(acc * acc, axis=0, keepdims=True)
    cache_ref[...] = acc[:, :cout].astype(cache_ref.dtype)


# ----------------------------------------------------------------------------
# Phase 2: folded BN scale/shift (precomputed once) + ReLU on the cached conv
# output.  Pure elementwise; narrow (tm, cout) blocks.
# ----------------------------------------------------------------------------
def _apply_kernel(c_ref, scale_ref, shift_ref, o_ref):
    acc = c_ref[...].astype(jnp.float32)
    o_ref[...] = jnp.maximum(acc * scale_ref[...] + shift_ref[...],
                             0.0).astype(o_ref.dtype)


@functools.partial(jax.jit, static_argnames=("conv3or1", "max_rows"))
def wblock_forward_nhwc(x, y, weight, bias, gamma, beta, *, conv3or1,
                        max_rows=2048):
    """NHWC-native core.  x: (N,H,W,Cx), y: (N,H,W,Cy) f32.
    weight: (cout, Cx+Cy, k, k) PyTorch OIHW.  Returns (N,H,W,cout) f32."""
    del bias  # cancels exactly under training-mode BatchNorm (see header)
    if conv3or1 not in (1, 3):
        raise ValueError("conv3or1 must be 1 or 3")

    N, H, W, cx = x.shape
    cy = y.shape[-1]
    cin = cx + cy
    cout = weight.shape[0]
    M = N * H * W
    c_pad = _round_up(cout, LANE)
    vmem_limit = _vmem_limit_bytes()
    vec_spec = pl.BlockSpec((1, c_pad), lambda i: (0, 0))

    if conv3or1 == 1:
        tm = _largest_divisor(M, max_rows, 8)
        if tm is None:
            raise ValueError("N*H*W must be a multiple of 8")
        x2 = x.reshape(M, cx)                         # free reshapes, no concat
        y2 = y.reshape(M, cy)
        w2 = jnp.transpose(weight[:, :, 0, 0], (1, 0))          # (cin, cout)
        w2 = jnp.pad(w2, ((0, 0), (0, c_pad - cout))).astype(jnp.bfloat16)
        wx, wy = w2[:cx], w2[cx:]

        ch_sum, ch_sq, cache = pl.pallas_call(
            functools.partial(_stats1_kernel, cout=cout),
            out_shape=(jax.ShapeDtypeStruct((1, c_pad), jnp.float32),
                       jax.ShapeDtypeStruct((1, c_pad), jnp.float32),
                       jax.ShapeDtypeStruct((M, cout), jnp.bfloat16)),
            grid=(M // tm,),
            in_specs=[pl.BlockSpec((tm, cx), lambda i: (i, 0)),
                      pl.BlockSpec((tm, cy), lambda i: (i, 0)),
                      pl.BlockSpec((cx, c_pad), lambda i: (0, 0)),
                      pl.BlockSpec((cy, c_pad), lambda i: (0, 0))],
            out_specs=(vec_spec, vec_spec,
                       pl.BlockSpec((tm, cout), lambda i: (i, 0))),
            compiler_params=pltpu.CompilerParams(
                dimension_semantics=("arbitrary",),
                vmem_limit_bytes=vmem_limit),
        )(x2, y2, wx, wy)
    else:
        kdim = 3 * cin
        th = _pick_th(H, W, kdim, vmem_limit // 3, max_rows)
        rows_main = th * W
        rows_slab = (th + 2) * W

        # Host glue: spatial pad + 3 dx-shifted channel-concatenated copies,
        # materialized once as bf16 (only 3x expansion; dy shifts are handled
        # in-kernel via the halo slab).
        xp = jnp.pad(x, ((0, 0), (1, 1), (1, 1), (0, 0)))
        yp = jnp.pad(y, ((0, 0), (1, 1), (1, 1), (0, 0)))
        parts = []
        for dx in range(3):
            parts.append(xp[:, :, dx:dx + W, :])
            parts.append(yp[:, :, dx:dx + W, :])
        a2 = jnp.concatenate(parts, axis=-1).astype(jnp.bfloat16)
        a2 = a2.reshape(N * (H + 2) * W, kdim)

        # Weight (cout, cin, dy, dx) -> per-dy (dx*cin + ci, cout), padded cols.
        wk = jnp.transpose(weight, (2, 3, 1, 0)).reshape(3, kdim, cout)
        wk = jnp.pad(wk, ((0, 0), (0, 0), (0, c_pad - cout))).astype(jnp.bfloat16)

        ch_sum, ch_sq, cache = pl.pallas_call(
            functools.partial(_stats3_kernel, H=H, W=W, th=th, cout=cout),
            out_shape=(jax.ShapeDtypeStruct((1, c_pad), jnp.float32),
                       jax.ShapeDtypeStruct((1, c_pad), jnp.float32),
                       jax.ShapeDtypeStruct((M, cout), jnp.bfloat16)),
            grid=(N * (H // th),),
            in_specs=[pl.BlockSpec(memory_space=pl.ANY),
                      pl.BlockSpec((3, kdim, c_pad), lambda i: (0, 0, 0))],
            out_specs=(vec_spec, vec_spec,
                       pl.BlockSpec((rows_main, cout), lambda i: (i, 0))),
            scratch_shapes=[pltpu.VMEM((2, rows_slab, kdim), jnp.bfloat16),
                            pltpu.SemaphoreType.DMA((2,))],
            compiler_params=pltpu.CompilerParams(
                dimension_semantics=("arbitrary",),
                vmem_limit_bytes=vmem_limit),
        )(a2, wk)

    # Fold BN once (train-mode batch stats; biased var, clamped >= 0).
    inv_m = 1.0 / float(M)
    mean = ch_sum[0, :cout] * inv_m
    var = jnp.maximum(ch_sq[0, :cout] * inv_m - mean * mean, 0.0)
    scale = gamma.astype(jnp.float32) * jax.lax.rsqrt(var + BN_EPS)
    shift = beta.astype(jnp.float32) - scale * mean

    tm2 = _largest_divisor(M, max_rows, 8)
    if tm2 is None:
        raise ValueError("N*H*W must be a multiple of 8")
    out2d = pl.pallas_call(
        _apply_kernel,
        out_shape=jax.ShapeDtypeStruct((M, cout), jnp.float32),
        grid=(M // tm2,),
        in_specs=[pl.BlockSpec((tm2, cout), lambda i: (i, 0)),
                  pl.BlockSpec((1, cout), lambda i: (0, 0)),
                  pl.BlockSpec((1, cout), lambda i: (0, 0))],
        out_specs=pl.BlockSpec((tm2, cout), lambda i: (i, 0)),
        compiler_params=pltpu.CompilerParams(
            dimension_semantics=("parallel",),
            vmem_limit_bytes=vmem_limit),
    )(cache, scale.reshape(1, cout), shift.reshape(1, cout))

    return out2d.reshape(N, H, W, cout)


@functools.partial(jax.jit, static_argnames=("conv3or1", "max_rows"))
def wblock_forward(x, y, weight, bias, gamma, beta, *, conv3or1, max_rows=2048):
    """NCHW drop-in wrapper (PyTorch layout) around the NHWC-native core."""
    xh = jnp.transpose(x, (0, 2, 3, 1))
    yh = jnp.transpose(y, (0, 2, 3, 1))
    out = wblock_forward_nhwc(xh, yh, weight, bias, gamma, beta,
                              conv3or1=conv3or1, max_rows=max_rows)
    return jnp.transpose(out, (0, 3, 1, 2))


def _reference(x, y, weight, bias, gamma, beta, conv3or1):
    """Pure-JAX f32 reference mirroring the PyTorch forward (train-mode BN)."""
    k = 1 if conv3or1 == 1 else 3
    inp = jnp.concatenate([x, y], axis=1)
    out = jax.lax.conv_general_dilated(
        inp, weight, window_strides=(1, 1),
        padding="VALID" if k == 1 else "SAME",
        dimension_numbers=("NCHW", "OIHW", "NCHW"),
        precision=jax.lax.Precision.HIGHEST,
    )
    out = out + bias[None, :, None, None]
    mean = out.mean(axis=(0, 2, 3), keepdims=True)
    var = ((out - mean) ** 2).mean(axis=(0, 2, 3), keepdims=True)
    xhat = (out - mean) / jnp.sqrt(var + BN_EPS)
    out = gamma[None, :, None, None] * xhat + beta[None, :, None, None]
    return jnp.maximum(out, 0.0)


if __name__ == "__main__":
    key = jax.random.PRNGKey(0)
    N, in_channel, y_channel, out_channel, H, W = 2, 4, 4, 8, 16, 16
    cin_tot = in_channel + y_channel

    kx, ky, kw1, kb1, kw3, kb3, kg, kbe = jax.random.split(key, 8)
    x = jax.random.normal(kx, (N, in_channel, H, W), jnp.float32)
    y = jax.random.normal(ky, (N, y_channel, H, W), jnp.float32)

    w1 = jax.random.normal(kw1, (out_channel, cin_tot, 1, 1), jnp.float32) * 0.1
    b1 = jax.random.normal(kb1, (out_channel,), jnp.float32) * 0.1
    w3 = jax.random.normal(kw3, (out_channel, cin_tot, 3, 3), jnp.float32) * 0.1
    b3 = jax.random.normal(kb3, (out_channel,), jnp.float32) * 0.1
    gamma = 1.0 + 0.1 * jax.random.normal(kg, (out_channel,), jnp.float32)
    beta = 0.1 * jax.random.normal(kbe, (out_channel,), jnp.float32)

    ok = True
    for conv3or1, w, b in ((1, w1, b1), (3, w3, b3)):
        # max_rows=256 -> >= 2 grid steps, exercising the resident-stat
        # accumulation and the double-buffered manual DMA prefetch path.
        out = wblock_forward(x, y, w, b, gamma, beta, conv3or1=conv3or1,
                             max_rows=256)
        out = jax.block_until_ready(out)
        ref = _reference(x, y, w, b, gamma, beta, conv3or1)
        err = float(jnp.max(jnp.abs(out - ref)))
        # bf16 MXU inputs + bf16 conv-output cache vs f32 HIGHEST reference.
        if not jnp.allclose(out, ref, atol=3e-2, rtol=3e-2):
            ok = False
            print(f"mismatch for conv3or1={conv3or1}: max err {err}")

    if ok:
        print("KERNEL_OK")
</pallas_src>

<mosaic_0001>
module attributes {stable_mosaic.version = 11 : i64} {
  func.func @_stats1_kernel(%arg0: i32, %arg1: memref<256x4xf32, #tpu.memory_space<vmem>>, %arg2: memref<256x4xf32, #tpu.memory_space<vmem>>, %arg3: memref<4x128xbf16, #tpu.memory_space<vmem>>, %arg4: memref<4x128xbf16, #tpu.memory_space<vmem>>, %arg5: memref<1x128xf32, #tpu.memory_space<vmem>>, %arg6: memref<1x128xf32, #tpu.memory_space<vmem>>, %arg7: memref<256x8xbf16, #tpu.memory_space<vmem>>) attributes {dimension_semantics = [#tpu.dimension_semantics<arbitrary>], iteration_bounds = array<i64: 2>, scalar_prefetch = 0 : i64, scratch_operands = 0 : i64, tpu.core_type = #tpu.core_type<tc>, window_params = [{transform_indices = @transform_0, window_bounds = array<i64: 256, 4>}, {transform_indices = @transform_1, window_bounds = array<i64: 256, 4>}, {pipeline_mode = #tpu.pipeline_mode<synchronous>, transform_indices = @transform_2, window_bounds = array<i64: 4, 128>}, {pipeline_mode = #tpu.pipeline_mode<synchronous>, transform_indices = @transform_3, window_bounds = array<i64: 4, 128>}, {pipeline_mode = #tpu.pipeline_mode<synchronous>, transform_indices = @transform_4, window_bounds = array<i64: 1, 128>}, {pipeline_mode = #tpu.pipeline_mode<synchronous>, transform_indices = @transform_5, window_bounds = array<i64: 1, 128>}, {transform_indices = @transform_6, window_bounds = array<i64: 256, 8>}]} {
    %c0_i32 = arith.constant 0 : i32
    %0 = arith.cmpi eq, %arg0, %c0_i32 : i32
    %1 = arith.extui %0 : i1 to i32
    %c0_i32_0 = arith.constant 0 : i32
    %2 = arith.cmpi ne, %1, %c0_i32_0 : i32
    scf.if %2 {
      %cst_21 = arith.constant 0.000000e+00 : f32
      %26 = vector.broadcast %cst_21 : f32 to vector<1x128xf32>
      %c0_22 = arith.constant 0 : index
      %c0_23 = arith.constant 0 : index
      %27 = vector.load %arg5[%c0_22, %c0_23] : memref<1x128xf32, #tpu.memory_space<vmem>>, vector<1x128xf32>
      tpu.vector_store %arg5[%c0_22, %c0_23], %26 {strides = array<i32>} : memref<1x128xf32, #tpu.memory_space<vmem>>, vector<1x128xf32>,
      %cst_24 = arith.constant 0.000000e+00 : f32
      %28 = vector.broadcast %cst_24 : f32 to vector<1x128xf32>
      %c0_25 = arith.constant 0 : index
      %c0_26 = arith.constant 0 : index
      %29 = vector.load %arg6[%c0_25, %c0_26] : memref<1x128xf32, #tpu.memory_space<vmem>>, vector<1x128xf32>
      tpu.vector_store %arg6[%c0_25, %c0_26], %28 {strides = array<i32>} : memref<1x128xf32, #tpu.memory_space<vmem>>, vector<1x128xf32>,
    } else {
    }
    %c0 = arith.constant 0 : index
    %c0_1 = arith.constant 0 : index
    %3 = vector.load %arg1[%c0, %c0_1] : memref<256x4xf32, #tpu.memory_space<vmem>>, vector<256x4xf32>
    %4 = arith.truncf %3 : vector<256x4xf32> to vector<256x4xbf16>
    %c0_2 = arith.constant 0 : index
    %c0_3 = arith.constant 0 : index
    %5 = vector.load %arg2[%c0_2, %c0_3] : memref<256x4xf32, #tpu.memory_space<vmem>>, vector<256x4xf32>
    %6 = arith.truncf %5 : vector<256x4xf32> to vector<256x4xbf16>
    %c0_4 = arith.constant 0 : index
    %c0_5 = arith.constant 0 : index
    %7 = vector.load %arg3[%c0_4, %c0_5] : memref<4x128xbf16, #tpu.memory_space<vmem>>, vector<4x128xbf16>
    %cst = arith.constant dense<0.000000e+00> : vector<256x128xf32>
    %8 = tpu.matmul %4, %7, %cst {dimension_numbers = #tpu.dot_dimension_numbers<[1], [0], [0], [1], [0, 0, 1, 1], [], []>} : vector<256x4xbf16>, vector<4x128xbf16>, vector<256x128xf32> -> vector<256x128xf32>
    %c0_6 = arith.constant 0 : index
    %c0_7 = arith.constant 0 : index
    %9 = vector.load %arg4[%c0_6, %c0_7] : memref<4x128xbf16, #tpu.memory_space<vmem>>, vector<4x128xbf16>
    %cst_8 = arith.constant dense<0.000000e+00> : vector<256x128xf32>
    %10 = tpu.matmul %6, %9, %cst_8 {dimension_numbers = #tpu.dot_dimension_numbers<[1], [0], [0], [1], [0, 0, 1, 1], [], []>} : vector<256x4xbf16>, vector<4x128xbf16>, vector<256x128xf32> -> vector<256x128xf32>
    %11 = arith.addf %8, %10 : vector<256x128xf32>
    %c0_9 = arith.constant 0 : index
    %c0_10 = arith.constant 0 : index
    %12 = vector.load %arg5[%c0_9, %c0_10] : memref<1x128xf32, #tpu.memory_space<vmem>>, vector<1x128xf32>
    %cst_11 = arith.constant dense<0.000000e+00> : vector<128xf32>
    %13 = vector.multi_reduction <add>, %11, %cst_11 [0] : vector<256x128xf32> to vector<128xf32>
    %14 = vector.shape_cast %13 : vector<128xf32> to vector<1x128xf32>
    %15 = arith.addf %12, %14 : vector<1x128xf32>
    %c0_12 = arith.constant 0 : index
    %c0_13 = arith.constant 0 : index
    %16 = vector.load %arg5[%c0_12, %c0_13] : memref<1x128xf32, #tpu.memory_space<vmem>>, vector<1x128xf32>
    tpu.vector_store %arg5[%c0_12, %c0_13], %15 {strides = array<i32>} : memref<1x128xf32, #tpu.memory_space<vmem>>, vector<1x128xf32>,
    %c0_14 = arith.constant 0 : index
    %c0_15 = arith.constant 0 : index
    %17 = vector.load %arg6[%c0_14, %c0_15] : memref<1x128xf32, #tpu.memory_space<vmem>>, vector<1x128xf32>
    %18 = arith.mulf %11, %11 : vector<256x128xf32>
    %cst_16 = arith.constant dense<0.000000e+00> : vector<128xf32>
    %19 = vector.multi_reduction <add>, %18, %cst_16 [0] : vector<256x128xf32> to vector<128xf32>
    %20 = vector.shape_cast %19 : vector<128xf32> to vector<1x128xf32>
    %21 = arith.addf %17, %20 : vector<1x128xf32>
    %c0_17 = arith.constant 0 : index
    %c0_18 = arith.constant 0 : index
    %22 = vector.load %arg6[%c0_17, %c0_18] : memref<1x128xf32, #tpu.memory_space<vmem>>, vector<1x128xf32>
    tpu.vector_store %arg6[%c0_17, %c0_18], %21 {strides = array<i32>} : memref<1x128xf32, #tpu.memory_space<vmem>>, vector<1x128xf32>,
    %23 = vector.extract_strided_slice %11 {offsets = [0, 0], sizes = [256, 8], strides = [1, 1]} : vector<256x128xf32> to vector<256x8xf32>
    %24 = arith.truncf %23 : vector<256x8xf32> to vector<256x8xbf16>
    %c0_19 = arith.constant 0 : index
    %c0_20 = arith.constant 0 : index
    %25 = vector.load %arg7[%c0_19, %c0_20] : memref<256x8xbf16, #tpu.memory_space<vmem>>, vector<256x8xbf16>
    tpu.vector_store %arg7[%c0_19, %c0_20], %24 {strides = array<i32>} : memref<256x8xbf16, #tpu.memory_space<vmem>>, vector<256x8xbf16>,
    return
  }
  func.func @transform_0(%arg0: i32) -> (i32, i32) {
    %c0_i32 = arith.constant 0 : i32
    %c0_i32_0 = arith.constant 0 : i32
    return %arg0, %c0_i32 : i32, i32
  }
  func.func @transform_1(%arg0: i32) -> (i32, i32) {
    %c0_i32 = arith.constant 0 : i32
    %c0_i32_0 = arith.constant 0 : i32
    return %arg0, %c0_i32 : i32, i32
  }
  func.func @transform_2(%arg0: i32) -> (i32, i32) {
    %c0_i32 = arith.constant 0 : i32
    %c0_i32_0 = arith.constant 0 : i32
    %c0_i32_1 = arith.constant 0 : i32
    return %c0_i32, %c0_i32_0 : i32, i32
  }
  func.func @transform_3(%arg0: i32) -> (i32, i32) {
    %c0_i32 = arith.constant 0 : i32
    %c0_i32_0 = arith.constant 0 : i32
    %c0_i32_1 = arith.constant 0 : i32
    return %c0_i32, %c0_i32_0 : i32, i32
  }
  func.func @transform_4(%arg0: i32) -> (i32, i32) {
    %c0_i32 = arith.constant 0 : i32
    %c0_i32_0 = arith.constant 0 : i32
    %c0_i32_1 = arith.constant 0 : i32
    return %c0_i32, %c0_i32_0 : i32, i32
  }
  func.func @transform_5(%arg0: i32) -> (i32, i32) {
    %c0_i32 = arith.constant 0 : i32
    %c0_i32_0 = arith.constant 0 : i32
    %c0_i32_1 = arith.constant 0 : i32
    return %c0_i32, %c0_i32_0 : i32, i32
  }
  func.func @transform_6(%arg0: i32) -> (i32, i32) {
    %c0_i32 = arith.constant 0 : i32
    %c0_i32_0 = arith.constant 0 : i32
    return %arg0, %c0_i32 : i32, i32
  }
}

module attributes {stable_mosaic.version = 11 : i64} {
  func.func @_apply_kernel(%arg0: i32, %arg1: memref<256x8xbf16, #tpu.memory_space<vmem>>, %arg2: memref<1x8xf32, #tpu.memory_space<vmem>>, %arg3: memref<1x8xf32, #tpu.memory_space<vmem>>, %arg4: memref<256x8xf32, #tpu.memory_space<vmem>>) attributes {dimension_semantics = [#tpu.dimension_semantics<parallel>], iteration_bounds = array<i64: 2>, scalar_prefetch = 0 : i64, scratch_operands = 0 : i64, tpu.core_type = #tpu.core_type<tc>, window_params = [{transform_indices = @transform_0, window_bounds = array<i64: 256, 8>}, {pipeline_mode = #tpu.pipeline_mode<synchronous>, transform_indices = @transform_1, window_bounds = array<i64: 1, 8>}, {pipeline_mode = #tpu.pipeline_mode<synchronous>, transform_indices = @transform_2, window_bounds = array<i64: 1, 8>}, {transform_indices = @transform_3, window_bounds = array<i64: 256, 8>}]} {
    %c0 = arith.constant 0 : index
    %c0_0 = arith.constant 0 : index
    %0 = vector.load %arg1[%c0, %c0_0] : memref<256x8xbf16, #tpu.memory_space<vmem>>, vector<256x8xbf16>
    %1 = arith.extf %0 : vector<256x8xbf16> to vector<256x8xf32>
    %c0_1 = arith.constant 0 : index
    %c0_2 = arith.constant 0 : index
    %2 = vector.load %arg2[%c0_1, %c0_2] : memref<1x8xf32, #tpu.memory_space<vmem>>, vector<1x8xf32>
    %3 = vector.broadcast %2 : vector<1x8xf32> to vector<256x8xf32>
    %4 = arith.mulf %1, %3 : vector<256x8xf32>
    %c0_3 = arith.constant 0 : index
    %c0_4 = arith.constant 0 : index
    %5 = vector.load %arg3[%c0_3, %c0_4] : memref<1x8xf32, #tpu.memory_space<vmem>>, vector<1x8xf32>
    %6 = vector.broadcast %5 : vector<1x8xf32> to vector<256x8xf32>
    %7 = arith.addf %4, %6 : vector<256x8xf32>
    %cst = arith.constant 0.000000e+00 : f32
    %8 = vector.broadcast %cst : f32 to vector<256x8xf32>
    %9 = arith.maximumf %7, %8 : vector<256x8xf32>
    %c0_5 = arith.constant 0 : index
    %c0_6 = arith.constant 0 : index
    %10 = vector.load %arg4[%c0_5, %c0_6] : memref<256x8xf32, #tpu.memory_space<vmem>>, vector<256x8xf32>
    tpu.vector_store %arg4[%c0_5, %c0_6], %9 {strides = array<i32>} : memref<256x8xf32, #tpu.memory_space<vmem>>, vector<256x8xf32>,
    return
  }
  func.func @transform_0(%arg0: i32) -> (i32, i32) {
    %c0_i32 = arith.constant 0 : i32
    %c0_i32_0 = arith.constant 0 : i32
    return %arg0, %c0_i32 : i32, i32
  }
  func.func @transform_1(%arg0: i32) -> (i32, i32) {
    %c0_i32 = arith.constant 0 : i32
    %c0_i32_0 = arith.constant 0 : i32
    %c0_i32_1 = arith.constant 0 : i32
    return %c0_i32, %c0_i32_0 : i32, i32
  }
  func.func @transform_2(%arg0: i32) -> (i32, i32) {
    %c0_i32 = arith.constant 0 : i32
    %c0_i32_0 = arith.constant 0 : i32
    %c0_i32_1 = arith.constant 0 : i32
    return %c0_i32, %c0_i32_0 : i32, i32
  }
  func.func @transform_3(%arg0: i32) -> (i32, i32) {
    %c0_i32 = arith.constant 0 : i32
    %c0_i32_0 = arith.constant 0 : i32
    return %arg0, %c0_i32 : i32, i32
  }
}

</mosaic_0001>

<bundles_post_ra>
// kernel: wblock_forward_nhwc.3
= control target key start
LH: loop header
LB: loop body
LE: loop exit
PB: predicated region body
PF: predicated region fallthrough
CT: control target
= control target key end

     0   :  { %s565_s12 = smov 0   ;;  %s744_s0 = inlined_call_operand.vmem [shape: bf16[512,8], index: 0, kind: input, shape index: {}]   ;;  %s745_s1 = inlined_call_operand.vmem [shape: f32[1,8], index: 1, kind: input, shape index: {}]   ;;  %s746_s2 = inlined_call_operand.vmem [shape: f32[1,8], index: 2, kind: input, shape index: {}]   ;;  %s747_s3 = inlined_call_operand.vmem [shape: f32[512,8], index: 3, kind: output, shape index: {}]  }
   0x1 LB: > { %s437_s13 = sadd.s32 4294967295, %s543_s12   ;;  %p441_p0 = scmp.ge.s32.totalorder %s543_s12, 1  ;;  %s543_s12 = sphi %s565_s12, %s13_s12  }
   0x2   : > { %p138_p1 = scmp.lt.s32.totalorder %s543_s12, 3 }
   0x4   : > { %p139_p2 = pnand %p441_p0, %p138_p1 }
   0x5   : > { %s442_s14 = sshll.u32 (!%p139_p2), %s437_s13, 5  ;;  %v584_v0 = vld [vmem:[%s745_s1] ss:$0 sm:$0xff] (!%p139_p2)  ;;  %vm348_vm0 = vcmask (!%p139_p2), 64512  }
   0x6   : > { %142 = sbr.rel (%p139_p2) target bundleno = 53 (0x35), region = 32  ;;  %p163_p3 = scmp.lt.s32.totalorder (!%p139_p2), %s442_s14, 63  ;;  %v593_v9 = vld [vmem:[%s746_s2] ss:$0 sm:$0xff] (!%p139_p2) }
   0xd   : > { %s749_s14 = smov (!%p163_p3, %s442_s14), 63 }
   0xe   : > { %s443_s15 = sshll.u32 %s749_s14, 2  ;;  %s445_s23 = sshll.u32 %s749_s14, 3 }
   0xf   : > { %s579_s18 = scalar_lea.vmem %s744_s0, %s443_s15  ;;  %s611_s26 = scalar_lea.vmem %s747_s3, %s445_s23 }
  0x10   : > { %v451_v1 = vld [vmem:[%s579_s18] sm:$0xff]   ;;  %v514_v2 = vld [vmem:[%s579_s18 + $0x8] sm:$0xff]   ;;  %v515_v3 = vld [vmem:[%s579_s18 + $0x10] sm:$0xff]  }
  0x11   : > { %v452_v4 = vunpack.c.l.bf16 %v451_v1  ;;  %v453_v5 = vunpack.c.h.bf16 %v451_v1  ;;  %v456_v6 = vunpack.c.l.bf16 %v514_v2  ;;  %v457_v7 = vunpack.c.h.bf16 %v514_v2  ;;  %v516_v8 = vld [vmem:[%s579_s18 + $0x18] sm:$0xff]   ;;  %v517_v30 = vld [vmem:[%s579_s18 + $0x20] sm:$0xff]   ;;  %v518_v31 = vld [vmem:[%s579_s18 + $0x28] sm:$0xff]  }
  0x12   : > { %v460_v10 = vunpack.c.l.bf16 %v515_v3  ;;  %v461_v11 = vunpack.c.h.bf16 %v515_v3  ;;  %v464_v12 = vunpack.c.l.bf16 %v516_v8  ;;  %v465_v13 = vunpack.c.h.bf16 %v516_v8  ;;  %v519_v36 = vld [vmem:[%s579_s18 + $0x30] sm:$0xff]   ;;  %v520_v37 = vld [vmem:[%s579_s18 + $0x38] sm:$0xff]   ;;  %v521_v3 = vld [vmem:[%s579_s18 + $0x40] sm:$0xff]  }
  0x13   : > { %v245_v14 = vmul.f32 %v452_v4, %v584_v0  ;;  %v246_v15 = vmul.f32 %v453_v5, %v584_v0  ;;  %v247_v16 = vmul.f32 %v456_v6, %v584_v0  ;;  %v248_v17 = vmul.f32 %v457_v7, %v584_v0  ;;  %v522_v4 = vld [vmem:[%s579_s18 + $0x48] sm:$0xff]  }
  0x14   : > { %v249_v18 = vmul.f32 %v460_v10, %v584_v0  ;;  %v250_v19 = vmul.f32 %v461_v11, %v584_v0  ;;  %v251_v20 = vmul.f32 %v464_v12, %v584_v0  ;;  %v252_v21 = vmul.f32 %v465_v13, %v584_v0  ;;  %v523_v10 = vld [vmem:[%s579_s18 + $0x50] sm:$0xff]   ;;  %v524_v11 = vld [vmem:[%s579_s18 + $0x58] sm:$0xff]  }
  0x15   : > { %v284_v22 = vadd.f32 %v593_v9, %v245_v14  ;;  %v285_v23 = vadd.f32 %v593_v9, %v246_v15  ;;  %v286_v24 = vadd.f32 %v593_v9, %v247_v16  ;;  %v287_v25 = vadd.f32 %v593_v9, %v248_v17 }
  0x16   : > { %v288_v26 = vadd.f32 %v593_v9, %v249_v18  ;;  %v289_v27 = vadd.f32 %v593_v9, %v250_v19  ;;  %v290_v28 = vadd.f32 %v593_v9, %v251_v20  ;;  %v291_v29 = vadd.f32 %v593_v9, %v252_v21 }
  0x17   : > { %v316_v32 = vmax.f32 %v284_v22, 0.0  ;;  %v317_v33 = vmax.f32 %v285_v23, 0.0  ;;  %v318_v34 = vmax.f32 %v286_v24, 0.0  ;;  %v319_v35 = vmax.f32 %v287_v25, 0.0 }
  0x18   : > { %v320_v38 = vmax.f32 %v288_v26, 0.0  ;;  %v321_v39 = vmax.f32 %v289_v27, 0.0  ;;  %v322_v40 = vmax.f32 %v290_v28, 0.0  ;;  %v323_v41 = vmax.f32 %v291_v29, 0.0 }
  0x19   : > { %349 = vst.msk [vmem:[%s611_s26] sm:$0xff] %vm348_vm0, %v316_v32  ;;  %350 = vst.msk [vmem:[%s611_s26 + $0x8] sm:$0xff] %vm348_vm0, %v317_v33  ;;  %v468_v42 = vunpack.c.l.bf16 %v517_v30  ;;  %v469_v43 = vunpack.c.h.bf16 %v517_v30  ;;  %v472_v44 = vunpack.c.l.bf16 %v518_v31  ;;  %v473_v45 = vunpack.c.h.bf16 %v518_v31 }
  0x1a   : > { %351 = vst.msk [vmem:[%s611_s26 + $0x10] sm:$0xff] %vm348_vm0, %v318_v34  ;;  %352 = vst.msk [vmem:[%s611_s26 + $0x18] sm:$0xff] %vm348_vm0, %v319_v35  ;;  %v476_v46 = vunpack.c.l.bf16 %v519_v36  ;;  %v477_v47 = vunpack.c.h.bf16 %v519_v36  ;;  %v480_v48 = vunpack.c.l.bf16 %v520_v37  ;;  %v481_v49 = vunpack.c.h.bf16 %v520_v37 }
  0x1b   : > { %353 = vst.msk [vmem:[%s611_s26 + $0x20] sm:$0xff] %vm348_vm0, %v320_v38  ;;  %354 = vst.msk [vmem:[%s611_s26 + $0x28] sm:$0xff] %vm348_vm0, %v321_v39  ;;  %v253_v50 = vmul.f32 %v468_v42, %v584_v0  ;;  %v254_v51 = vmul.f32 %v469_v43, %v584_v0  ;;  %v255_v52 = vmul.f32 %v472_v44, %v584_v0  ;;  %v484_v16 = vunpack.c.l.bf16 %v521_v3 }
  0x1c   : > { %355 = vst.msk [vmem:[%s611_s26 + $0x30] sm:$0xff] %vm348_vm0, %v322_v40  ;;  %356 = vst.msk [vmem:[%s611_s26 + $0x38] sm:$0xff] %vm348_vm0, %v323_v41  ;;  %v256_v53 = vmul.f32 %v473_v45, %v584_v0  ;;  %v257_v54 = vmul.f32 %v476_v46, %v584_v0  ;;  %v258_v55 = vmul.f32 %v477_v47, %v584_v0  ;;  %v485_v17 = vunpack.c.h.bf16 %v521_v3  ;;  %v525_v40 = vld [vmem:[%s579_s18 + $0x60] sm:$0xff]   ;;  %v526_v41 = vld [vmem:[%s579_s18 + $0x68] sm:$0xff]  }
  0x1d   : > { %v259_v56 = vmul.f32 %v480_v48, %v584_v0  ;;  %v260_v57 = vmul.f32 %v481_v49, %v584_v0  ;;  %v292_v58 = vadd.f32 %v593_v9, %v253_v50  ;;  %v293_v59 = vadd.f32 %v593_v9, %v254_v51  ;;  %v527_v46 = vld [vmem:[%s579_s18 + $0x70] sm:$0xff]   ;;  %v528_v47 = vld [vmem:[%s579_s18 + $0x78] sm:$0xff]  }
  0x1e   : > { %v294_v60 = vadd.f32 %v593_v9, %v255_v52  ;;  %v295_v61 = vadd.f32 %v593_v9, %v256_v53  ;;  %v296_v62 = vadd.f32 %v593_v9, %v257_v54  ;;  %v297_v63 = vadd.f32 %v593_v9, %v258_v55 }
  0x1f   : > { %v298_v1 = vadd.f32 %v593_v9, %v259_v56  ;;  %v299_v2 = vadd.f32 %v593_v9, %v260_v57  ;;  %v324_v5 = vmax.f32 %v292_v58, 0.0  ;;  %v325_v6 = vmax.f32 %v293_v59, 0.0 }
  0x20   : > { %v326_v7 = vmax.f32 %v294_v60, 0.0  ;;  %v327_v8 = vmax.f32 %v295_v61, 0.0  ;;  %v328_v12 = vmax.f32 %v296_v62, 0.0  ;;  %v329_v13 = vmax.f32 %v297_v63, 0.0 }
  0x21   : > { %v330_v14 = vmax.f32 %v298_v1, 0.0  ;;  %v331_v15 = vmax.f32 %v299_v2, 0.0  ;;  %357 = vst.msk [vmem:[%s611_s26 + $0x40] sm:$0xff] %vm348_vm0, %v324_v5  ;;  %358 = vst.msk [vmem:[%s611_s26 + $0x48] sm:$0xff] %vm348_vm0, %v325_v6  ;;  %v488_v18 = vunpack.c.l.bf16 %v522_v4  ;;  %v489_v19 = vunpack.c.h.bf16 %v522_v4 }
  0x22   : > { %359 = vst.msk [vmem:[%s611_s26 + $0x50] sm:$0xff] %vm348_vm0, %v326_v7  ;;  %360 = vst.msk [vmem:[%s611_s26 + $0x58] sm:$0xff] %vm348_vm0, %v327_v8  ;;  %v492_v20 = vunpack.c.l.bf16 %v523_v10  ;;  %v493_v21 = vunpack.c.h.bf16 %v523_v10  ;;  %v496_v22 = vunpack.c.l.bf16 %v524_v11  ;;  %v497_v23 = vunpack.c.h.bf16 %v524_v11 }
  0x23   : > { %361 = vst.msk [vmem:[%s611_s26 + $0x60] sm:$0xff] %vm348_vm0, %v328_v12  ;;  %362 = vst.msk [vmem:[%s611_s26 + $0x68] sm:$0xff] %vm348_vm0, %v329_v13  ;;  %v261_v24 = vmul.f32 %v484_v16, %v584_v0  ;;  %v262_v25 = vmul.f32 %v485_v17, %v584_v0  ;;  %v263_v26 = vmul.f32 %v488_v18, %v584_v0  ;;  %v500_v52 = vunpack.c.l.bf16 %v525_v40 }
  0x24   : > { %363 = vst.msk [vmem:[%s611_s26 + $0x70] sm:$0xff] %vm348_vm0, %v330_v14  ;;  %364 = vst.msk [vmem:[%s611_s26 + $0x78] sm:$0xff] %vm348_vm0, %v331_v15  ;;  %v264_v27 = vmul.f32 %v489_v19, %v584_v0  ;;  %v265_v28 = vmul.f32 %v492_v20, %v584_v0  ;;  %v266_v29 = vmul.f32 %v493_v21, %v584_v0  ;;  %v501_v53 = vunpack.c.h.bf16 %v525_v40 }
  0x25   : > { %v267_v30 = vmul.f32 %v496_v22, %v584_v0  ;;  %v268_v31 = vmul.f32 %v497_v23, %v584_v0  ;;  %v300_v32 = vadd.f32 %v593_v9, %v261_v24  ;;  %v301_v33 = vadd.f32 %v593_v9, %v262_v25 }
  0x26   : > { %v302_v34 = vadd.f32 %v593_v9, %v263_v26  ;;  %v303_v35 = vadd.f32 %v593_v9, %v264_v27  ;;  %v304_v36 = vadd.f32 %v593_v9, %v265_v28  ;;  %v305_v37 = vadd.f32 %v593_v9, %v266_v29 }
  0x27   : > { %v306_v38 = vadd.f32 %v593_v9, %v267_v30  ;;  %v307_v39 = vadd.f32 %v593_v9, %v268_v31  ;;  %v332_v42 = vmax.f32 %v300_v32, 0.0  ;;  %v333_v43 = vmax.f32 %v301_v33, 0.0 }
  0x28   : > { %v334_v44 = vmax.f32 %v302_v34, 0.0  ;;  %v335_v45 = vmax.f32 %v303_v35, 0.0  ;;  %v336_v48 = vmax.f32 %v304_v36, 0.0  ;;  %v337_v49 = vmax.f32 %v305_v37, 0.0 }
  0x29   : > { %v338_v50 = vmax.f32 %v306_v38, 0.0  ;;  %v339_v51 = vmax.f32 %v307_v39, 0.0  ;;  %365 = vst.msk [vmem:[%s611_s26 + $0x80] sm:$0xff] %vm348_vm0, %v332_v42  ;;  %366 = vst.msk [vmem:[%s611_s26 + $0x88] sm:$0xff] %vm348_vm0, %v333_v43  ;;  %v504_v54 = vunpack.c.l.bf16 %v526_v41  ;;  %v505_v55 = vunpack.c.h.bf16 %v526_v41 }
  0x2a   : > { %367 = vst.msk [vmem:[%s611_s26 + $0x90] sm:$0xff] %vm348_vm0, %v334_v44  ;;  %368 = vst.msk [vmem:[%s611_s26 + $0x98] sm:$0xff] %vm348_vm0, %v335_v45  ;;  %v508_v56 = vunpack.c.l.bf16 %v527_v46  ;;  %v509_v57 = vunpack.c.h.bf16 %v527_v46  ;;  %v512_v58 = vunpack.c.l.bf16 %v528_v47  ;;  %v513_v59 = vunpack.c.h.bf16 %v528_v47 }
  0x2b   : > { %369 = vst.msk [vmem:[%s611_s26 + $0xa0] sm:$0xff] %vm348_vm0, %v336_v48  ;;  %370 = vst.msk [vmem:[%s611_s26 + $0xa8] sm:$0xff] %vm348_vm0, %v337_v49  ;;  %v269_v60 = vmul.f32 %v500_v52, %v584_v0  ;;  %v270_v61 = vmul.f32 %v501_v53, %v584_v0  ;;  %v271_v62 = vmul.f32 %v504_v54, %v584_v0 }
  0x2c   : > { %371 = vst.msk [vmem:[%s611_s26 + $0xb0] sm:$0xff] %vm348_vm0, %v338_v50  ;;  %372 = vst.msk [vmem:[%s611_s26 + $0xb8] sm:$0xff] %vm348_vm0, %v339_v51  ;;  %v272_v63 = vmul.f32 %v505_v55, %v584_v0  ;;  %v273_v1 = vmul.f32 %v508_v56, %v584_v0  ;;  %v274_v2 = vmul.f32 %v509_v57, %v584_v0 }
  0x2d   : > { %v275_v3 = vmul.f32 %v512_v58, %v584_v0  ;;  %v276_v4 = vmul.f32 %v513_v59, %v584_v0  ;;  %v308_v5 = vadd.f32 %v593_v9, %v269_v60  ;;  %v309_v6 = vadd.f32 %v593_v9, %v270_v61 }
  0x2e   : > { %v310_v7 = vadd.f32 %v593_v9, %v271_v62  ;;  %v311_v8 = vadd.f32 %v593_v9, %v272_v63  ;;  %v312_v10 = vadd.f32 %v593_v9, %v273_v1  ;;  %v313_v11 = vadd.f32 %v593_v9, %v274_v2 }
  0x2f   : > { %v314_v0 = vadd.f32 %v593_v9, %v275_v3  ;;  %v315_v12 = vadd.f32 %v593_v9, %v276_v4  ;;  %v340_v13 = vmax.f32 %v308_v5, 0.0  ;;  %v341_v14 = vmax.f32 %v309_v6, 0.0 }
  0x30   : > { %v342_v15 = vmax.f32 %v310_v7, 0.0  ;;  %v343_v16 = vmax.f32 %v311_v8, 0.0  ;;  %v344_v17 = vmax.f32 %v312_v10, 0.0  ;;  %v345_v18 = vmax.f32 %v313_v11, 0.0 }
  0x31   : > { %v346_v19 = vmax.f32 %v314_v0, 0.0  ;;  %v347_v20 = vmax.f32 %v315_v12, 0.0  ;;  %373 = vst.msk [vmem:[%s611_s26 + $0xc0] sm:$0xff] %vm348_vm0, %v340_v13  ;;  %374 = vst.msk [vmem:[%s611_s26 + $0xc8] sm:$0xff] %vm348_vm0, %v341_v14 }
  0x32   : > { %375 = vst.msk [vmem:[%s611_s26 + $0xd0] sm:$0xff] %vm348_vm0, %v342_v15  ;;  %376 = vst.msk [vmem:[%s611_s26 + $0xd8] sm:$0xff] %vm348_vm0, %v343_v16 }
  0x33   : > { %377 = vst.msk [vmem:[%s611_s26 + $0xe0] sm:$0xff] %vm348_vm0, %v344_v17  ;;  %378 = vst.msk [vmem:[%s611_s26 + $0xe8] sm:$0xff] %vm348_vm0, %v345_v18 }
  0x34   : > { %379 = vst.msk [vmem:[%s611_s26 + $0xf0] sm:$0xff] %vm348_vm0, %v346_v19  ;;  %380 = vst.msk [vmem:[%s611_s26 + $0xf8] sm:$0xff] %vm348_vm0, %v347_v20 }
  0x35 PF: > { %s13_s12 = sadd.s32 1, %s543_s12  }
  0x36   : > { %p10_p4 = scmp.ge.s32.totalorder %s13_s12, 4  }
  0x38   :  { %12 = sbr.rel (!%p10_p4) target bundleno = 1 (0x1), region = 62 }

// kernel: wblock_forward_nhwc.2
= control target key start
LH: loop header
LB: loop body
LE: loop exit
PB: predicated region body
PF: predicated region fallthrough
CT: control target
= control target key end

     0   :  { %s1455_s21 = smov 0   ;;  %s1665_s0 = inlined_call_operand.vmem [shape: f32[512,4], index: 0, kind: input, shape index: {}]   ;;  %s1666_s1 = inlined_call_operand.vmem [shape: f32[512,4], index: 1, kind: input, shape index: {}]   ;;  %s1667_s2 = inlined_call_operand.vmem [shape: bf16[4,128], index: 2, kind: input, shape index: {}]   ;;  %s1668_s3 = inlined_call_operand.vmem [shape: bf16[4,128], index: 3, kind: input, shape index: {}]   ;;  %s1669_s4 = inlined_call_operand.vmem [shape: f32[1,128], index: 4, kind: output, shape index: {0}]   ;;  %s1670_s5 = inlined_call_operand.vmem [shape: f32[1,128], index: 5, kind: output, shape index: {1}]   ;;  %s1671_s6 = inlined_call_operand.vmem [shape: bf16[512,8], index: 6, kind: output, shape index: {2}]  }
   0x1 LB: > { %s1156_s22 = sadd.s32 4294967295, %s1417_s21   ;;  %p1160_p0 = scmp.ge.s32.totalorder %s1417_s21, 1  ;;  %s1417_s21 = sphi %s1455_s21, %s17_s21  }
   0x2   : > { %p219_p1 = scmp.lt.s32.totalorder %s1417_s21, 3 }
   0x4   : > { %p220_p2 = pnand %p1160_p0, %p219_p1 }
   0x5   : > { %s1161_s23 = sshll.u32 (!%p220_p2), %s1156_s22, 5  ;;  %p1167_p4 = scmp.ne.s32.totalorder (!%p220_p2), %s1156_s22, 0 }
   0x6   : > { %223 = sbr.rel (%p220_p2) target bundleno = 324 (0x144), region = 36  ;;  %p255_p3 = scmp.lt.s32.totalorder (!%p220_p2), %s1161_s23, 63 }
   0xd   : > { %s1673_s23 = smov (!%p255_p3, %s1161_s23), 63  ;;  %276 = sbr.rel (%p1167_p4) target bundleno = 20 (0x14), region = 40 }
   0xe   : > { %s1162_s24 = sshll.u32 %s1673_s23, 3  ;;  %s1166_s25 = sshll.u32 %s1673_s23, 2  ;;  %v1419_v0 = vmov (!%p1167_p4), 0.0  }
   0xf   : > { %s1466_s28 = scalar_lea.vmem %s1665_s0, %s1162_s24  ;;  %s1471_s7 = scalar_lea.vmem %s1666_s1, %s1162_s24  ;;  %277 = vst [vmem:[%s1669_s4] sm:$0x1] (!%p1167_p4), %v1419_v0  ;;  %278 = vst [vmem:[%s1670_s5] sm:$0x1] (!%p1167_p4), %v1419_v0 }
  0x10   : > { %s1476_s10 = scalar_lea.vmem %s1671_s6, %s1166_s25 }
  0x14 PF: > { %v376_v1 = vld [vmem:[%s1668_s3] sm:$0x3]  ;;  %vm426_vm0 = vcmask 1041408   ;;  %v328_v6 = vld [vmem:[%s1471_s7 + $0x8] sm:$0xff]  ;;  %vm377_vm1 = vcmask 31744   ;;  %v329_v11 = vld [vmem:[%s1471_s7 + $0x10] sm:$0xff] }
  0x15   : > { %v375_v2 = vld [vmem:[%s1667_s2] sm:$0x3]  ;;  %1400 = vmatprep.subr.msk.bf16.mxu1 %vm426_vm0, %v376_v1  ;;  %v428_v4 = vsel %vm426_vm0, %v376_v1, 0  ;;  %v280_v8 = vld [vmem:[%s1466_s28 + $0x8] sm:$0xff]  ;;  %v330_v12 = vld [vmem:[%s1471_s7 + $0x18] sm:$0xff]  ;;  %vm1043_vm2 = vcmask 60416  }
  0x16   : > { %v327_v3 = vld [vmem:[%s1471_s7] sm:$0xff]  ;;  %1401 = vmatprep.subr.msk.bf16.mxu0 %vm426_vm0, %v375_v2  ;;  %v640_v5 = vsel %vm426_vm0, %v375_v2, 0  ;;  %1301 = vmatpush3.bf16.msra.mxu1 %v428_v4  ;;  %v281_v13 = vld [vmem:[%s1466_s28 + $0x10] sm:$0xff]  ;;  %v360_v14 = vpack.c.bf16 %v330_v12, %v329_v11  ;;  %v282_v15 = vld [vmem:[%s1466_s28 + $0x18] sm:$0xff] }
  0x17   : > { %v279_v7 = vld [vmem:[%s1466_s28] sm:$0xff]  ;;  %1335 = vmatpush3.bf16.msra.mxu0 %v640_v5  ;;  %v359_v9 = vpack.c.bf16 %v328_v6, %v327_v3  ;;  %v332_v17 = vld [vmem:[%s1471_s7 + $0x28] sm:$0xff]  ;;  %v312_v18 = vpack.c.bf16 %v282_v15, %v281_v13  ;;  %v333_v23 = vld [vmem:[%s1471_s7 + $0x30] sm:$0xff] }
  0x18   : > { %v311_v10 = vpack.c.bf16 %v280_v8, %v279_v7  ;;  %v331_v16 = vld [vmem:[%s1471_s7 + $0x20] sm:$0xff]  ;;  %v284_v21 = vld [vmem:[%s1466_s28 + $0x28] sm:$0xff]  ;;  %v334_v24 = vld [vmem:[%s1471_s7 + $0x38] sm:$0xff] }
  0x19   : > { %1302 = vmatprep.mubr.msk.bf16.mxu1 %vm377_vm1, %v359_v9  ;;  %v361_v19 = vpack.c.bf16 %v332_v17, %v331_v16  ;;  %v283_v20 = vld [vmem:[%s1466_s28 + $0x20] sm:$0xff]  ;;  %v285_v25 = vld [vmem:[%s1466_s28 + $0x30] sm:$0xff]  ;;  %v286_v26 = vld [vmem:[%s1466_s28 + $0x38] sm:$0xff]  ;;  %v362_v31 = vpack.c.bf16 %v334_v24, %v333_v23 }
  0x1a   : > { %1336 = vmatprep.mubr.msk.bf16.mxu0 %vm377_vm1, %v311_v10  ;;  %1303 = vmatmul.mubr.msk.bf16.vlgmr.msra.gmra.mrb[0].mxu1 %vm377_vm1, %v360_v14  ;;  %v313_v22 = vpack.c.bf16 %v284_v21, %v283_v20  ;;  %v335_v27 = vld [vmem:[%s1471_s7 + $0x40] sm:$0xff]  ;;  %v336_v28 = vld [vmem:[%s1471_s7 + $0x48] sm:$0xff]  ;;  %v314_v32 = vpack.c.bf16 %v286_v26, %v285_v25  ;;  %v337_v35 = vld [vmem:[%s1471_s7 + $0x50] sm:$0xff] }
  0x1b   : > { %1337 = vmatmul.mubr.msk.bf16.vlgmr.msra.gmra.mrb[0].mxu0 %vm377_vm1, %v312_v18  ;;  %1306 = vmatprep.mubr.msk.bf16.mxu1 %vm377_vm1, %v361_v19  ;;  %v287_v29 = vld [vmem:[%s1466_s28 + $0x40] sm:$0xff]  ;;  %v288_v30 = vld [vmem:[%s1466_s28 + $0x48] sm:$0xff]  ;;  %v363_v33 = vpack.c.bf16 %v336_v28, %v335_v27  ;;  %v338_v36 = vld [vmem:[%s1471_s7 + $0x58] sm:$0xff] }
  0x1c   : > { %1340 = vmatprep.mubr.msk.bf16.mxu0 %vm377_vm1, %v313_v22  ;;  %v315_v34 = vpack.c.bf16 %v288_v30, %v287_v29  ;;  %v289_v37 = vld [vmem:[%s1466_s28 + $0x50] sm:$0xff]  ;;  %v290_v38 = vld [vmem:[%s1466_s28 + $0x58] sm:$0xff]  ;;  %v339_v39 = vld [vmem:[%s1471_s7 + $0x60] sm:$0xff]  ;;  %v364_v43 = vpack.c.bf16 %v338_v36, %v337_v35 }
  0x1d   : > { %v340_v40 = vld [vmem:[%s1471_s7 + $0x68] sm:$0xff]  ;;  %v291_v41 = vld [vmem:[%s1466_s28 + $0x60] sm:$0xff]  ;;  %v316_v44 = vpack.c.bf16 %v290_v38, %v289_v37  ;;  %v341_v47 = vld [vmem:[%s1471_s7 + $0x70] sm:$0xff] }
  0x1e   : > { %v292_v42 = vld [vmem:[%s1466_s28 + $0x68] sm:$0xff]  ;;  %v365_v45 = vpack.c.bf16 %v340_v40, %v339_v39  ;;  %v342_v48 = vld [vmem:[%s1471_s7 + $0x78] sm:$0xff]  ;;  %v293_v49 = vld [vmem:[%s1466_s28 + $0x70] sm:$0xff] }
  0x1f   : > { %v317_v46 = vpack.c.bf16 %v292_v42, %v291_v41  ;;  %v294_v50 = vld [vmem:[%s1466_s28 + $0x78] sm:$0xff]  ;;  %v343_v51 = vld [vmem:[%s1471_s7 + $0x80] sm:$0xff]  ;;  %v344_v52 = vld [vmem:[%s1471_s7 + $0x88] sm:$0xff]  ;;  %v366_v55 = vpack.c.bf16 %v342_v48, %v341_v47 }
  0x20   : > { %v295_v53 = vld [vmem:[%s1466_s28 + $0x80] sm:$0xff]  ;;  %v296_v54 = vld [vmem:[%s1466_s28 + $0x88] sm:$0xff]  ;;  %v318_v56 = vpack.c.bf16 %v294_v50, %v293_v49  ;;  %v367_v57 = vpack.c.bf16 %v344_v52, %v343_v51  ;;  %v345_v59 = vld [vmem:[%s1471_s7 + $0x90] sm:$0xff] }
  0x21   : > { %v319_v58 = vpack.c.bf16 %v296_v54, %v295_v53  ;;  %v346_v60 = vld [vmem:[%s1471_s7 + $0x98] sm:$0xff]  ;;  %v297_v61 = vld [vmem:[%s1466_s28 + $0x90] sm:$0xff]  ;;  %v347_v63 = vld [vmem:[%s1471_s7 + $0xa0] sm:$0xff] }
  0x22   : > { %1307 = vmatmul.mubr.msk.bf16.gmra.mrb[4].mxu1 %vm377_vm1, %v362_v31  ;;  %v298_v62 = vld [vmem:[%s1466_s28 + $0x98] sm:$0xff]  ;;  %v348_v0 = vld [vmem:[%s1471_s7 + $0xa8] sm:$0xff]  ;;  %v299_v1 = vld [vmem:[%s1466_s28 + $0xa0] sm:$0xff]  ;;  %v368_v3 = vpack.c.bf16 %v346_v60, %v345_v59 }
  0x23   : > { %1341 = vmatmul.mubr.msk.bf16.gmra.mrb[4].mxu0 %vm377_vm1, %v314_v32  ;;  %1310 = vmatprep.mubr.msk.bf16.mxu1 %vm377_vm1, %v363_v33  ;;  %v300_v2 = vld [vmem:[%s1466_s28 + $0xa8] sm:$0xff]  ;;  %v320_v4 = vpack.c.bf16 %v298_v62, %v297_v61  ;;  %v369_v5 = vpack.c.bf16 %v348_v0, %v347_v63  ;;  %v349_v7 = vld [vmem:[%s1471_s7 + $0xb0] sm:$0xff]  ;;  %v350_v8 = vld [vmem:[%s1471_s7 + $0xb8] sm:$0xff] }
  0x24   : > { %1344 = vmatprep.mubr.msk.bf16.mxu0 %vm377_vm1, %v315_v34  ;;  %v321_v6 = vpack.c.bf16 %v300_v2, %v299_v1  ;;  %v301_v9 = vld [vmem:[%s1466_s28 + $0xb0] sm:$0xff]  ;;  %v302_v10 = vld [vmem:[%s1466_s28 + $0xb8] sm:$0xff]  ;;  %v351_v11 = vld [vmem:[%s1471_s7 + $0xc0] sm:$0xff]  ;;  %v370_v15 = vpack.c.bf16 %v350_v8, %v349_v7 }
  0x25   : > { %v352_v12 = vld [vmem:[%s1471_s7 + $0xc8] sm:$0xff]  ;;  %v303_v13 = vld [vmem:[%s1466_s28 + $0xc0] sm:$0xff]  ;;  %v322_v16 = vpack.c.bf16 %v302_v10, %v301_v9  ;;  %v353_v19 = vld [vmem:[%s1471_s7 + $0xd0] sm:$0xff] }
  0x26   : > { %v304_v14 = vld [vmem:[%s1466_s28 + $0xc8] sm:$0xff]  ;;  %v371_v17 = vpack.c.bf16 %v352_v12, %v351_v11  ;;  %v354_v20 = vld [vmem:[%s1471_s7 + $0xd8] sm:$0xff]  ;;  %v305_v21 = vld [vmem:[%s1466_s28 + $0xd0] sm:$0xff] }
  0x27   : > { %v323_v18 = vpack.c.bf16 %v304_v14, %v303_v13  ;;  %v306_v22 = vld [vmem:[%s1466_s28 + $0xd8] sm:$0xff]  ;;  %v355_v23 = vld [vmem:[%s1471_s7 + $0xe0] sm:$0xff]  ;;  %v356_v24 = vld [vmem:[%s1471_s7 + $0xe8] sm:$0xff]  ;;  %v372_v27 = vpack.c.bf16 %v354_v20, %v353_v19 }
  0x28   : > { %v307_v25 = vld [vmem:[%s1466_s28 + $0xe0] sm:$0xff]  ;;  %v308_v26 = vld [vmem:[%s1466_s28 + $0xe8] sm:$0xff]  ;;  %v324_v28 = vpack.c.bf16 %v306_v22, %v305_v21  ;;  %v373_v29 = vpack.c.bf16 %v356_v24, %v355_v23  ;;  %v357_v31 = vld [vmem:[%s1471_s7 + $0xf0] sm:$0xff] }
  0x29   : > { %v325_v30 = vpack.c.bf16 %v308_v26, %v307_v25  ;;  %v358_v32 = vld [vmem:[%s1471_s7 + $0xf8] sm:$0xff]  ;;  %v309_v33 = vld [vmem:[%s1466_s28 + $0xf0] sm:$0xff] }
  0x2a   : > { %1311 = vmatmul.mubr.msk.bf16.gmra.mrb[8].mxu1 %vm377_vm1, %v364_v43  ;;  %v310_v34 = vld [vmem:[%s1466_s28 + $0xf8] sm:$0xff]  ;;  %v374_v35 = vpack.c.bf16 %v358_v32, %v357_v31 }
  0x2b   : > { %1345 = vmatmul.mubr.msk.bf16.gmra.mrb[8].mxu0 %vm377_vm1, %v316_v44  ;;  %1314 = vmatprep.mubr.msk.bf16.mxu1 %vm377_vm1, %v365_v45  ;;  %v326_v36 = vpack.c.bf16 %v310_v34, %v309_v33 }
  0x2c   : > { %1348 = vmatprep.mubr.msk.bf16.mxu0 %vm377_vm1, %v317_v46 }
  0x32   : > { %1315 = vmatmul.mubr.msk.bf16.gmra.mrb[12].mxu1 %vm377_vm1, %v366_v55 }
  0x33   : > { %1349 = vmatmul.mubr.msk.bf16.gmra.mrb[12].mxu0 %vm377_vm1, %v318_v56  ;;  %1318 = vmatprep.mubr.msk.bf16.mxu1 %vm377_vm1, %v367_v57 }
  0x34   : > { %1352 = vmatprep.mubr.msk.bf16.mxu0 %vm377_vm1, %v319_v58 }
  0x3a   : > { %1319 = vmatmul.mubr.msk.bf16.gmra.mrb[16].mxu1 %vm377_vm1, %v368_v3 }
  0x3b   : > { %1353 = vmatmul.mubr.msk.bf16.gmra.mrb[16].mxu0 %vm377_vm1, %v320_v4  ;;  %1322 = vmatprep.mubr.msk.bf16.mxu1 %vm377_vm1, %v369_v5 }
  0x3c   : > { %1356 = vmatprep.mubr.msk.bf16.mxu0 %vm377_vm1, %v321_v6 }
  0x42   : > { %1323 = vmatmul.mubr.msk.bf16.gmra.mrb[20].mxu1 %vm377_vm1, %v370_v15 }
  0x43   : > { %1357 = vmatmul.mubr.msk.bf16.gmra.mrb[20].mxu0 %vm377_vm1, %v322_v16  ;;  %1326 = vmatprep.mubr.msk.bf16.mxu1 %vm377_vm1, %v371_v17 }
  0x44   : > { %1360 = vmatprep.mubr.msk.bf16.mxu0 %vm377_vm1, %v323_v18 }
  0x4a   : > { %1327 = vmatmul.mubr.msk.bf16.gmra.mrb[24].mxu1 %vm377_vm1, %v372_v27 }
  0x4b   : > { %1361 = vmatmul.mubr.msk.bf16.gmra.mrb[24].mxu0 %vm377_vm1, %v324_v28  ;;  %1330 = vmatprep.mubr.msk.bf16.mxu1 %vm377_vm1, %v373_v29 }
  0x4c   : > { %1364 = vmatprep.mubr.msk.bf16.mxu0 %vm377_vm1, %v325_v30 }
  0x52   : > { %1331 = vmatmul.mubr.msk.bf16.gmra.mrb[28].mxu1 %vm377_vm1, %v374_v35 }
  0x53   : > { %1365 = vmatmul.mubr.msk.bf16.gmra.mrb[28].mxu0 %vm377_vm1, %v326_v36 }
  0xed   : > { %v1304_v37 = vpop.f32.mrb[0].mxu1 }
  0xee   : > { %v1338_v38 = vpop.f32.mrb[0].mxu0  ;;  %v464_v39 = vpop.f32.mrb[1].mxu1 }
  0xef   : > { %v685_v40 = vadd.f32 %v1338_v38, %v1304_v37  ;;  %v676_v41 = vpop.f32.mrb[1].mxu0  ;;  %v1305_v42 = vpop.f32.mrb[2].mxu1 }
  0xf0   : > { %v677_v43 = vadd.f32 %v676_v41, %v464_v39  ;;  %v1339_v44 = vpop.f32.mrb[2].mxu0  ;;  %v467_v45 = vpop.f32.mrb[3].mxu1 }
  0xf1   : > { %v1236_v46 = vpack.c.bf16 %v685_v40, %v685_v40  ;;  %v688_v47 = vadd.f32 %v1339_v44, %v1305_v42  ;;  %v679_v48 = vpop.f32.mrb[3].mxu0  ;;  %v846_v57 = vmul.f32 %v685_v40, %v685_v40 }
  0xf2   : > { %v1234_v49 = vpack.c.bf16 %v677_v43, %v677_v43  ;;  %v680_v50 = vadd.f32 %v679_v48, %v467_v45  ;;  %v844_v52 = vmul.f32 %v677_v43, %v677_v43 }
  0xf3   : > { %1046 = vst.msk [vmem:[%s1476_s10 + $0x8] sm:$0xf] %vm1043_vm2, %v1236_v46  ;;  %v1237_v51 = vpack.c.bf16 %v688_v47, %v688_v47  ;;  %v847_v1 = vmul.f32 %v688_v47, %v688_v47 }
  0xf4   : > { %1044 = vst.msk [vmem:[%s1476_s10] sm:$0xf] %vm1043_vm2, %v1234_v49  ;;  %v804_v53 = vadd.f32 %v680_v50, %v677_v43  ;;  %v845_v54 = vmul.f32 %v680_v50, %v680_v50  ;;  %v1235_v55 = vpack.c.bf16 %v680_v50, %v680_v50 }
  0xf5   : > { %1047 = vst.msk [vmem:[%s1476_s10 + $0xc] sm:$0xf] %vm1043_vm2, %v1237_v51  ;;  %v1308_v56 = vpop.f32.mrb[4].mxu1 }
  0xf6   : > { %v805_v58 = vadd.f32 %v804_v53, %v685_v40  ;;  %v876_v59 = vadd.f32 %v845_v54, %v844_v52  ;;  %1045 = vst.msk [vmem:[%s1476_s10 + $0x4] sm:$0xf] %vm1043_vm2, %v1235_v55  ;;  %v1342_v60 = vpop.f32.mrb[4].mxu0  ;;  %v480_v61 = vpop.f32.mrb[5].mxu1 }
  0xf7   : > { %v701_v62 = vadd.f32 %v1342_v60, %v1308_v56  ;;  %v692_v63 = vpop.f32.mrb[5].mxu0  ;;  %v1309_v0 = vpop.f32.mrb[6].mxu1 }
  0xf8   : > { %v877_v2 = vadd.f32 %v876_v59, %v846_v57  ;;  %v693_v3 = vadd.f32 %v692_v63, %v480_v61  ;;  %v806_v4 = vadd.f32 %v805_v58, %v688_v47  ;;  %v1343_v5 = vpop.f32.mrb[6].mxu0  ;;  %v483_v6 = vpop.f32.mrb[7].mxu1 }
  0xf9   : > { %v1240_v7 = vpack.c.bf16 %v701_v62, %v701_v62  ;;  %v704_v8 = vadd.f32 %v1343_v5, %v1309_v0  ;;  %v695_v9 = vpop.f32.mrb[7].mxu0  ;;  %v850_v23 = vmul.f32 %v701_v62, %v701_v62 }
  0xfa   : > { %v807_v10 = vadd.f32 %v806_v4, %v693_v3  ;;  %v848_v11 = vmul.f32 %v693_v3, %v693_v3  ;;  %v878_v12 = vadd.f32 %v877_v2, %v847_v1  ;;  %v1238_v13 = vpack.c.bf16 %v693_v3, %v693_v3 }
  0xfb   : > { %1050 = vst.msk [vmem:[%s1476_s10 + $0x18] sm:$0xf] %vm1043_vm2, %v1240_v7  ;;  %v1241_v14 = vpack.c.bf16 %v704_v8, %v704_v8  ;;  %v696_v15 = vadd.f32 %v695_v9, %v483_v6  ;;  %v851_v32 = vmul.f32 %v704_v8, %v704_v8 }
  0xfc   : > { %v879_v16 = vadd.f32 %v878_v12, %v848_v11  ;;  %1048 = vst.msk [vmem:[%s1476_s10 + $0x10] sm:$0xf] %vm1043_vm2, %v1238_v13 }
  0xfd   : > { %1051 = vst.msk [vmem:[%s1476_s10 + $0x1c] sm:$0xf] %vm1043_vm2, %v1241_v14  ;;  %v808_v17 = vadd.f32 %v807_v10, %v696_v15  ;;  %v849_v18 = vmul.f32 %v696_v15, %v696_v15  ;;  %v1239_v19 = vpack.c.bf16 %v696_v15, %v696_v15  ;;  %v1312_v20 = vpop.f32.mrb[8].mxu1 }
  0xfe   : > { %v1346_v21 = vpop.f32.mrb[8].mxu0  ;;  %v496_v22 = vpop.f32.mrb[9].mxu1 }
  0xff   : > { %v809_v24 = vadd.f32 %v808_v17, %v701_v62  ;;  %v880_v25 = vadd.f32 %v879_v16, %v849_v18  ;;  %1049 = vst.msk [vmem:[%s1476_s10 + $0x14] sm:$0xf] %vm1043_vm2, %v1239_v19  ;;  %v717_v26 = vadd.f32 %v1346_v21, %v1312_v20  ;;  %v708_v27 = vpop.f32.mrb[9].mxu0  ;;  %v1313_v28 = vpop.f32.mrb[10].mxu1 }
 0x100   : > { %v709_v29 = vadd.f32 %v708_v27, %v496_v22  ;;  %v1347_v30 = vpop.f32.mrb[10].mxu0  ;;  %v499_v31 = vpop.f32.mrb[11].mxu1 }
 0x101   : > { %v881_v33 = vadd.f32 %v880_v25, %v850_v23  ;;  %v1244_v34 = vpack.c.bf16 %v717_v26, %v717_v26  ;;  %v810_v35 = vadd.f32 %v809_v24, %v704_v8  ;;  %v711_v36 = vpop.f32.mrb[11].mxu0  ;;  %v720_v39 = vadd.f32 %v1347_v30, %v1313_v28 }
 0x102   : > { %v852_v37 = vmul.f32 %v709_v29, %v709_v29  ;;  %v1242_v38 = vpack.c.bf16 %v709_v29, %v709_v29  ;;  %v712_v40 = vadd.f32 %v711_v36, %v499_v31  ;;  %v854_v51 = vmul.f32 %v717_v26, %v717_v26 }
 0x103   : > { %1054 = vst.msk [vmem:[%s1476_s10 + $0x28] sm:$0xf] %vm1043_vm2, %v1244_v34  ;;  %v811_v41 = vadd.f32 %v810_v35, %v709_v29  ;;  %v882_v42 = vadd.f32 %v881_v33, %v851_v32  ;;  %v1245_v43 = vpack.c.bf16 %v720_v39, %v720_v39  ;;  %v855_v60 = vmul.f32 %v720_v39, %v720_v39 }
 0x104   : > { %1052 = vst.msk [vmem:[%s1476_s10 + $0x20] sm:$0xf] %vm1043_vm2, %v1242_v38  ;;  %v853_v44 = vmul.f32 %v712_v40, %v712_v40  ;;  %v1243_v45 = vpack.c.bf16 %v712_v40, %v712_v40 }
 0x105   : > { %v883_v46 = vadd.f32 %v882_v42, %v852_v37  ;;  %v812_v47 = vadd.f32 %v811_v41, %v712_v40  ;;  %v1316_v48 = vpop.f32.mrb[12].mxu1  ;;  %1055 = vst.msk [vmem:[%s1476_s10 + $0x2c] sm:$0xf] %vm1043_vm2, %v1245_v43 }
 0x106   : > { %1053 = vst.msk [vmem:[%s1476_s10 + $0x24] sm:$0xf] %vm1043_vm2, %v1243_v45  ;;  %v1350_v49 = vpop.f32.mrb[12].mxu0  ;;  %v512_v50 = vpop.f32.mrb[13].mxu1 }
 0x107   : > { %v813_v52 = vadd.f32 %v812_v47, %v717_v26  ;;  %v884_v53 = vadd.f32 %v883_v46, %v853_v44  ;;  %v733_v54 = vadd.f32 %v1350_v49, %v1316_v48  ;;  %v724_v55 = vpop.f32.mrb[13].mxu0  ;;  %v1317_v56 = vpop.f32.mrb[14].mxu1 }
 0x108   : > { %v725_v57 = vadd.f32 %v724_v55, %v512_v50  ;;  %v1351_v58 = vpop.f32.mrb[14].mxu0  ;;  %v515_v59 = vpop.f32.mrb[15].mxu1 }
 0x109   : > { %v885_v61 = vadd.f32 %v884_v53, %v854_v51  ;;  %v1248_v62 = vpack.c.bf16 %v733_v54, %v733_v54  ;;  %v814_v63 = vadd.f32 %v813_v52, %v720_v39  ;;  %v727_v0 = vpop.f32.mrb[15].mxu0  ;;  %v736_v3 = vadd.f32 %v1351_v58, %v1317_v56 }
 0x10a   : > { %v856_v1 = vmul.f32 %v725_v57, %v725_v57  ;;  %v1246_v2 = vpack.c.bf16 %v725_v57, %v725_v57  ;;  %v728_v4 = vadd.f32 %v727_v0, %v515_v59  ;;  %v858_v15 = vmul.f32 %v733_v54, %v733_v54 }
 0x10b   : > { %1058 = vst.msk [vmem:[%s1476_s10 + $0x38] sm:$0xf] %vm1043_vm2, %v1248_v62  ;;  %v815_v5 = vadd.f32 %v814_v63, %v725_v57  ;;  %v886_v6 = vadd.f32 %v885_v61, %v855_v60  ;;  %v1249_v7 = vpack.c.bf16 %v736_v3, %v736_v3  ;;  %v859_v24 = vmul.f32 %v736_v3, %v736_v3 }
 0x10c   : > { %1056 = vst.msk [vmem:[%s1476_s10 + $0x30] sm:$0xf] %vm1043_vm2, %v1246_v2  ;;  %v857_v8 = vmul.f32 %v728_v4, %v728_v4  ;;  %v1247_v9 = vpack.c.bf16 %v728_v4, %v728_v4 }
 0x10d   : > { %v887_v10 = vadd.f32 %v886_v6, %v856_v1  ;;  %v816_v11 = vadd.f32 %v815_v5, %v728_v4  ;;  %v1320_v12 = vpop.f32.mrb[16].mxu1  ;;  %1059 = vst.msk [vmem:[%s1476_s10 + $0x3c] sm:$0xf] %vm1043_vm2, %v1249_v7 }
 0x10e   : > { %1057 = vst.msk [vmem:[%s1476_s10 + $0x34] sm:$0xf] %vm1043_vm2, %v1247_v9  ;;  %v1354_v13 = vpop.f32.mrb[16].mxu0  ;;  %v528_v14 = vpop.f32.mrb[17].mxu1 }
 0x10f   : > { %v817_v16 = vadd.f32 %v816_v11, %v733_v54  ;;  %v888_v17 = vadd.f32 %v887_v10, %v857_v8  ;;  %v749_v18 = vadd.f32 %v1354_v13, %v1320_v12  ;;  %v740_v19 = vpop.f32.mrb[17].mxu0  ;;  %v1321_v20 = vpop.f32.mrb[18].mxu1 }
 0x110   : > { %v741_v21 = vadd.f32 %v740_v19, %v528_v14  ;;  %v1355_v22 = vpop.f32.mrb[18].mxu0  ;;  %v531_v23 = vpop.f32.mrb[19].mxu1 }
 0x111   : > { %v889_v25 = vadd.f32 %v888_v17, %v858_v15  ;;  %v1252_v26 = vpack.c.bf16 %v749_v18, %v749_v18  ;;  %v818_v27 = vadd.f32 %v817_v16, %v736_v3  ;;  %v743_v28 = vpop.f32.mrb[19].mxu0  ;;  %v752_v31 = vadd.f32 %v1355_v22, %v1321_v20 }
 0x112   : > { %v860_v29 = vmul.f32 %v741_v21, %v741_v21  ;;  %v1250_v30 = vpack.c.bf16 %v741_v21, %v741_v21  ;;  %v744_v32 = vadd.f32 %v743_v28, %v531_v23  ;;  %v862_v43 = vmul.f32 %v749_v18, %v749_v18 }
 0x113   : > { %1062 = vst.msk [vmem:[%s1476_s10 + $0x48] sm:$0xf] %vm1043_vm2, %v1252_v26  ;;  %v819_v33 = vadd.f32 %v818_v27, %v741_v21  ;;  %v890_v34 = vadd.f32 %v889_v25, %v859_v24  ;;  %v1253_v35 = vpack.c.bf16 %v752_v31, %v752_v31  ;;  %v863_v52 = vmul.f32 %v752_v31, %v752_v31 }
 0x114   : > { %1060 = vst.msk [vmem:[%s1476_s10 + $0x40] sm:$0xf] %vm1043_vm2, %v1250_v30  ;;  %v861_v36 = vmul.f32 %v744_v32, %v744_v32  ;;  %v1251_v37 = vpack.c.bf16 %v744_v32, %v744_v32 }
 0x115   : > { %v891_v38 = vadd.f32 %v890_v34, %v860_v29  ;;  %v820_v39 = vadd.f32 %v819_v33, %v744_v32  ;;  %v1324_v40 = vpop.f32.mrb[20].mxu1  ;;  %1063 = vst.msk [vmem:[%s1476_s10 + $0x4c] sm:$0xf] %vm1043_vm2, %v1253_v35 }
 0x116   : > { %1061 = vst.msk [vmem:[%s1476_s10 + $0x44] sm:$0xf] %vm1043_vm2, %v1251_v37  ;;  %v1358_v41 = vpop.f32.mrb[20].mxu0  ;;  %v544_v42 = vpop.f32.mrb[21].mxu1 }
 0x117   : > { %v821_v44 = vadd.f32 %v820_v39, %v749_v18  ;;  %v892_v45 = vadd.f32 %v891_v38, %v861_v36  ;;  %v765_v46 = vadd.f32 %v1358_v41, %v1324_v40  ;;  %v756_v47 = vpop.f32.mrb[21].mxu0  ;;  %v1325_v48 = vpop.f32.mrb[22].mxu1 }
 0x118   : > { %v757_v49 = vadd.f32 %v756_v47, %v544_v42  ;;  %v1359_v50 = vpop.f32.mrb[22].mxu0  ;;  %v547_v51 = vpop.f32.mrb[23].mxu1 }
 0x119   : > { %v893_v53 = vadd.f32 %v892_v45, %v862_v43  ;;  %v1256_v54 = vpack.c.bf16 %v765_v46, %v765_v46  ;;  %v822_v55 = vadd.f32 %v821_v44, %v752_v31  ;;  %v759_v56 = vpop.f32.mrb[23].mxu0  ;;  %v768_v59 = vadd.f32 %v1359_v50, %v1325_v48 }
 0x11a   : > { %v864_v57 = vmul.f32 %v757_v49, %v757_v49  ;;  %v1254_v58 = vpack.c.bf16 %v757_v49, %v757_v49  ;;  %v760_v60 = vadd.f32 %v759_v56, %v547_v51  ;;  %v866_v7 = vmul.f32 %v765_v46, %v765_v46 }
 0x11b   : > { %1066 = vst.msk [vmem:[%s1476_s10 + $0x58] sm:$0xf] %vm1043_vm2, %v1256_v54  ;;  %v823_v61 = vadd.f32 %v822_v55, %v757_v49  ;;  %v894_v62 = vadd.f32 %v893_v53, %v863_v52  ;;  %v1257_v63 = vpack.c.bf16 %v768_v59, %v768_v59  ;;  %v867_v16 = vmul.f32 %v768_v59, %v768_v59 }
 0x11c   : > { %1064 = vst.msk [vmem:[%s1476_s10 + $0x50] sm:$0xf] %vm1043_vm2, %v1254_v58  ;;  %v865_v0 = vmul.f32 %v760_v60, %v760_v60  ;;  %v1255_v1 = vpack.c.bf16 %v760_v60, %v760_v60 }
 0x11d   : > { %v895_v2 = vadd.f32 %v894_v62, %v864_v57  ;;  %v824_v3 = vadd.f32 %v823_v61, %v760_v60  ;;  %v1328_v4 = vpop.f32.mrb[24].mxu1  ;;  %1067 = vst.msk [vmem:[%s1476_s10 + $0x5c] sm:$0xf] %vm1043_vm2, %v1257_v63 }
 0x11e   : > { %1065 = vst.msk [vmem:[%s1476_s10 + $0x54] sm:$0xf] %vm1043_vm2, %v1255_v1  ;;  %v1362_v5 = vpop.f32.mrb[24].mxu0  ;;  %v560_v6 = vpop.f32.mrb[25].mxu1 }
 0x11f   : > { %v825_v8 = vadd.f32 %v824_v3, %v765_v46  ;;  %v896_v9 = vadd.f32 %v895_v2, %v865_v0  ;;  %v781_v10 = vadd.f32 %v1362_v5, %v1328_v4  ;;  %v772_v11 = vpop.f32.mrb[25].mxu0  ;;  %v1329_v12 = vpop.f32.mrb[26].mxu1 }
 0x120   : > { %v773_v13 = vadd.f32 %v772_v11, %v560_v6  ;;  %v1363_v14 = vpop.f32.mrb[26].mxu0  ;;  %v563_v15 = vpop.f32.mrb[27].mxu1 }
 0x121   : > { %v897_v17 = vadd.f32 %v896_v9, %v866_v7  ;;  %v1260_v18 = vpack.c.bf16 %v781_v10, %v781_v10  ;;  %v826_v19 = vadd.f32 %v825_v8, %v768_v59  ;;  %v775_v20 = vpop.f32.mrb[27].mxu0  ;;  %v784_v23 = vadd.f32 %v1363_v14, %v1329_v12  ;;  %v803_v12 = vld [vmem:[%s1669_s4] sm:$0x1] }
 0x122   : > { %v868_v21 = vmul.f32 %v773_v13, %v773_v13  ;;  %v1258_v22 = vpack.c.bf16 %v773_v13, %v773_v13  ;;  %v776_v24 = vadd.f32 %v775_v20, %v563_v15  ;;  %v870_v35 = vmul.f32 %v781_v10, %v781_v10  ;;  %v843_v15 = vld [vmem:[%s1670_s5] sm:$0x1] }
 0x123   : > { %1070 = vst.msk [vmem:[%s1476_s10 + $0x68] sm:$0xf] %vm1043_vm2, %v1260_v18  ;;  %v827_v25 = vadd.f32 %v826_v19, %v773_v13  ;;  %v898_v26 = vadd.f32 %v897_v17, %v867_v16  ;;  %v1261_v27 = vpack.c.bf16 %v784_v23, %v784_v23  ;;  %v871_v44 = vmul.f32 %v784_v23, %v784_v23 }
 0x124   : > { %1068 = vst.msk [vmem:[%s1476_s10 + $0x60] sm:$0xf] %vm1043_vm2, %v1258_v22  ;;  %v869_v28 = vmul.f32 %v776_v24, %v776_v24  ;;  %v1259_v29 = vpack.c.bf16 %v776_v24, %v776_v24 }
 0x125   : > { %v899_v30 = vadd.f32 %v898_v26, %v868_v21  ;;  %v828_v31 = vadd.f32 %v827_v25, %v776_v24  ;;  %v1332_v32 = vpop.f32.mrb[28].mxu1  ;;  %1071 = vst.msk [vmem:[%s1476_s10 + $0x6c] sm:$0xf] %vm1043_vm2, %v1261_v27 }
 0x126   : > { %1069 = vst.msk [vmem:[%s1476_s10 + $0x64] sm:$0xf] %vm1043_vm2, %v1259_v29  ;;  %v1366_v33 = vpop.f32.mrb[28].mxu0  ;;  %v576_v34 = vpop.f32.mrb[29].mxu1 }
 0x127   : > { %v829_v36 = vadd.f32 %v828_v31, %v781_v10  ;;  %v900_v37 = vadd.f32 %v899_v30, %v869_v28  ;;  %v797_v38 = vadd.f32 %v1366_v33, %v1332_v32  ;;  %v788_v39 = vpop.f32.mrb[29].mxu0  ;;  %v1333_v40 = vpop.f32.mrb[30].mxu1 }
 0x128   : > { %v789_v41 = vadd.f32 %v788_v39, %v576_v34  ;;  %v1367_v42 = vpop.f32.mrb[30].mxu0  ;;  %v579_v43 = vpop.f32.mrb[31].mxu1 }
 0x129   : > { %v901_v45 = vadd.f32 %v900_v37, %v870_v35  ;;  %v1264_v46 = vpack.c.bf16 %v797_v38, %v797_v38  ;;  %v830_v47 = vadd.f32 %v829_v36, %v784_v23  ;;  %v791_v48 = vpop.f32.mrb[31].mxu0  ;;  %v800_v51 = vadd.f32 %v1367_v42, %v1333_v40 }
 0x12a   : > { %v872_v49 = vmul.f32 %v789_v41, %v789_v41  ;;  %v1262_v50 = vpack.c.bf16 %v789_v41, %v789_v41  ;;  %v792_v52 = vadd.f32 %v791_v48, %v579_v43  ;;  %v874_v60 = vmul.f32 %v797_v38, %v797_v38 }
 0x12b   : > { %1074 = vst.msk [vmem:[%s1476_s10 + $0x78] sm:$0xf] %vm1043_vm2, %v1264_v46  ;;  %v831_v53 = vadd.f32 %v830_v47, %v789_v41  ;;  %v902_v54 = vadd.f32 %v901_v45, %v871_v44  ;;  %v1265_v55 = vpack.c.bf16 %v800_v51, %v800_v51  ;;  %v875_v63 = vmul.f32 %v800_v51, %v800_v51 }
 0x12c   : > { %1072 = vst.msk [vmem:[%s1476_s10 + $0x70] sm:$0xf] %vm1043_vm2, %v1262_v50  ;;  %v873_v56 = vmul.f32 %v792_v52, %v792_v52  ;;  %v1263_v57 = vpack.c.bf16 %v792_v52, %v792_v52 }
 0x12d   : > { %v903_v58 = vadd.f32 %v902_v54, %v872_v49  ;;  %v832_v59 = vadd.f32 %v831_v53, %v792_v52  ;;  %1075 = vst.msk [vmem:[%s1476_s10 + $0x7c] sm:$0xf] %vm1043_vm2, %v1265_v55 }
 0x12e   : > { %1073 = vst.msk [vmem:[%s1476_s10 + $0x74] sm:$0xf] %vm1043_vm2, %v1263_v57 }
 0x12f   : > { %v833_v61 = vadd.f32 %v832_v59, %v797_v38  ;;  %v904_v62 = vadd.f32 %v903_v58, %v873_v56 }
 0x131   : > { %v834_v0 = vadd.f32 %v833_v61, %v800_v51  ;;  %v905_v1 = vadd.f32 %v904_v62, %v874_v60 }
 0x133   : > { %v835_v2 = vrot.slane %v834_v0, 4  ;;  %v906_v3 = vadd.f32 %v905_v1, %v875_v63 }
 0x135   : > { %v836_v4 = vadd.f32 %v835_v2, %v834_v0  ;;  %v907_v5 = vrot.slane %v906_v3, 4 }
 0x137   : > { %v837_v6 = vrot.slane %v836_v4, 2  ;;  %v908_v7 = vadd.f32 %v907_v5, %v906_v3 }
 0x139   : > { %v838_v8 = vadd.f32 %v837_v6, %v836_v4  ;;  %v909_v9 = vrot.slane %v908_v7, 2 }
 0x13b   : > { %v839_v10 = vrot.slane %v838_v8, 1  ;;  %v910_v11 = vadd.f32 %v909_v9, %v908_v7 }
 0x13d   : > { %v840_v13 = vadd.f32 %v839_v10, %v838_v8  ;;  %v911_v14 = vrot.slane %v910_v11, 1 }
 0x13f   : > { %v841_v16 = vadd.f32 %v840_v13, %v803_v12  ;;  %v912_v17 = vadd.f32 %v911_v14, %v910_v11 }
 0x141   : > { %842 = vst [vmem:[%s1669_s4] sm:$0x1] %v841_v16  ;;  %v913_v18 = vadd.f32 %v912_v17, %v843_v15 }
 0x143   : > { %914 = vst [vmem:[%s1670_s5] sm:$0x1] %v913_v18 }
 0x144 PF: > { %s17_s21 = sadd.s32 1, %s1417_s21  }
 0x145   : > { %p14_p5 = scmp.ge.s32.totalorder %s17_s21, 4  }
 0x147   :  { %16 = sbr.rel (!%p14_p5) target bundleno = 1 (0x1), region = 89 }

</bundles_post_ra>
